<compile_context>
chip_gen: v5e
topology: v5e:2x2
jax: 0.10.0
libtpu: 0.0.40
codegen_flags: <defaults>
</compile_context>

<pallas_src>
import jax
import jax.numpy as jnp
from jax.experimental import pallas as pl
from jax.experimental.pallas import tpu as pltpu


def _round_up(x, n):
    return ((x + n - 1) // n) * n


def _cdiv(a, b):
    return (a + b - 1) // b


def _tpu_params():
    """Returns (vmem_capacity_bytes, mxu_quantum, has_two_tensorcores)."""
    vmem_bytes = 64 << 20  # conservative default (v7x per-TC size)
    try:
        vmem_bytes = int(pltpu.get_tpu_info().vmem_capacity_bytes)
    except Exception:
        pass
    kind = ""
    try:
        kind = jax.devices()[0].device_kind.lower()
    except Exception:
        pass
    old_gen = any(t in kind for t in ("v2", "v3", "v4", "v5"))
    mxu_quantum = 128 if old_gen else 256     # v6e/v7x MXU is 256-wide
    two_cores = "v7" in kind                  # v7x: 2 TensorCores per chip
    return vmem_bytes, mxu_quantum, two_cores


# ----------------------------------------------------------------------------
# Kernels
# ----------------------------------------------------------------------------

def _fused_kernel(x_ref, w_ref, b_ref, o_ref):
    # Single K block: x:(tm,K)  w:(K,tn)  b:(1,tn)  o:(tm,tn).
    acc = jnp.dot(x_ref[...], w_ref[...], preferred_element_type=jnp.float32)
    o_ref[...] = (acc + b_ref[...].astype(jnp.float32)).astype(o_ref.dtype)


def _fused_kernel_ksplit(x_ref, w_ref, b_ref, o_ref, acc_ref):
    # Reduction over the (last, "arbitrary") K grid axis with an f32 scratch.
    k = pl.program_id(2)

    @pl.when(k == 0)
    def _():
        acc_ref[...] = jnp.zeros_like(acc_ref)

    acc_ref[...] += jnp.dot(x_ref[...], w_ref[...],
                            preferred_element_type=jnp.float32)

    @pl.when(k == pl.num_programs(2) - 1)
    def _():
        o_ref[...] = (acc_ref[...] + b_ref[...].astype(jnp.float32)
                      ).astype(o_ref.dtype)


def _factored_kernel(x_ref, w0t_ref, w1t_ref, b_ref, o_ref):
    # Low-rank path: x:(tm,K)  w0t:(K,r)  w1t:(r,tn)  b:(1,tn)  o:(tm,tn).
    h = jnp.dot(x_ref[...], w0t_ref[...], preferred_element_type=jnp.float32)
    acc = jnp.dot(h.astype(w1t_ref.dtype), w1t_ref[...],
                  preferred_element_type=jnp.float32)
    o_ref[...] = (acc + b_ref[...].astype(jnp.float32)).astype(o_ref.dtype)


# ----------------------------------------------------------------------------
# Wrapper
# ----------------------------------------------------------------------------

def svd_prepare(w0, w1, b=None, *, fuse=None):
    """One-time weight preprocessing (transpose / fuse / lane-dense padding).

    Cache the returned dict per weight update; svd_apply only reads it, so the
    per-call cost is just the kernel itself.
    w0: [r, input_size] (lin0.weight), w1: [output_size, r] (lin1.weight),
    b:  [output_size] or None (lin1.bias).
    """
    r, input_size = w0.shape
    output_size, r_chk = w1.shape
    assert r_chk == r
    dtype = w0.dtype
    vmem_bytes, q, _ = _tpu_params()

    if b is None:
        b = jnp.zeros((output_size,), dtype=dtype)
    b2d = b.reshape(1, output_size)

    # Lane-dense output: pad tiny outputs to a 128 multiple so row stores are
    # unmasked vst; the wrapper slices the (trivially small) padding off.
    n_pad = _round_up(output_size, 128) if output_size < 128 else output_size
    pad_n = n_pad - output_size
    if pad_n:
        b2d = jnp.pad(b2d, ((0, 0), (0, pad_n)))

    if fuse is None:
        # MXU-generation-aware tile counting (256 on v6e/v7x, 128 on v5e).
        t_in = _cdiv(input_size, q)
        t_out = _cdiv(output_size, q)
        t_r = _cdiv(r, q)
        flops_prefer_fused = t_in * t_out <= t_in * t_r + t_r * t_out
        # Factored path keeps both weights fully resident (single M grid); if
        # that does not comfortably fit the VMEM budget, fall back to the
        # fused path, which can tile N/K arbitrarily.
        itemsize = jnp.dtype(dtype).itemsize
        budget = int(vmem_bytes * 3 // 4)
        factored_resident = (input_size * r + r * n_pad + n_pad) * itemsize
        factored_fits = factored_resident + (16 << 20) <= budget
        fuse = flops_prefer_fused or not factored_fits

    if fuse:
        # Fuse once with f32 accumulation (review: bf16-accumulated weight
        # products drift vs. the reference two-GEMM computation).
        w_eff_t = jnp.dot(w0.T.astype(jnp.float32), w1.T.astype(jnp.float32),
                          preferred_element_type=jnp.float32).astype(dtype)
        if pad_n:
            w_eff_t = jnp.pad(w_eff_t, ((0, 0), (0, pad_n)))
        return dict(mode="fused", w=w_eff_t, b=b2d, r=r,
                    input_size=input_size, output_size=output_size,
                    n_pad=n_pad)

    w0t = w0.T                                   # (input_size, r)
    w1t = w1.T                                   # (r, output_size) -> pad cols
    if pad_n:
        w1t = jnp.pad(w1t, ((0, 0), (0, pad_n)))
    return dict(mode="factored", w0t=w0t, w1t=w1t, b=b2d, r=r,
                input_size=input_size, output_size=output_size, n_pad=n_pad)


def svd_apply(x, params, *, tm=None, tn=512, tk=None, vmem_limit_bytes=None):
    input_size = params["input_size"]
    output_size = params["output_size"]
    n_pad = params["n_pad"]
    mode = params["mode"]

    lead_shape = x.shape[:-1]
    x2d = x.reshape(-1, input_size)
    m = x2d.shape[0]
    itemsize = jnp.dtype(x.dtype).itemsize

    vmem_bytes, q, two_cores = _tpu_params()
    budget = int(vmem_bytes * 3 // 4)   # ~96 MiB on 128 MiB parts, ~48 MiB v7x
    m_align = 256 if q == 256 else 128  # MXU M granularity per generation

    # ---- row tile -----------------------------------------------------------
    if tm is None:
        tm = 512 if vmem_bytes >= (100 << 20) else 256
    if two_cores and m > m_align:
        # v7x: guarantee >= 2 row blocks so both TensorCores get work.
        tm = min(tm, _round_up(_cdiv(m, 2), m_align))
    if m >= m_align:
        tm = min(tm, _round_up(m, m_align))
        tm = max(m_align, (tm // m_align) * m_align)   # keep MXU M fully packed
    else:
        tm = max(8, min(_round_up(tm, 8), _round_up(m, 8)))
    # Ragged last row block: Pallas masks the store.  NOTE: garbage padded rows
    # ARE computed — only safe because this GEMM is row-independent.
    grid_m = _cdiv(m, tm)

    # ---- column (N) tile ----------------------------------------------------
    if n_pad % 128 == 0:
        tn = max(128, (min(tn, n_pad) // 128) * 128)
        while n_pad % tn != 0:               # avoid ragged (masked) N stores
            tn -= 128
    else:
        tn = n_pad                           # full-extent block (ragged >=128)
    grid_n = _cdiv(n_pad, tn)

    if mode == "fused":
        w, b2d = params["w"], params["b"]
        w_itemsize = jnp.dtype(w.dtype).itemsize

        def working_set(tk_, w_bufs):
            return (2 * tm * tk_ * itemsize            # x tiles (double buf)
                    + w_bufs * tk_ * tn * w_itemsize   # weight tiles
                    + 2 * tm * tn * itemsize           # out tiles
                    + tm * tn * 4                      # f32 accumulator
                    + 2 * tn * itemsize)               # bias

        if tk is None:
            tk = input_size
            if working_set(tk, 1) > budget and input_size % 128 == 0:
                # K-tile: largest 128-multiple divisor of K fitting the budget.
                chunks = input_size // 128
                tk = 128
                for d in range(1, chunks + 1):
                    if chunks % d == 0 and working_set(d * 128, 2) <= budget:
                        tk = d * 128
            # TODO(synk): if input_size is not a 128 multiple and exceeds the
            # VMEM budget we still run untiled (may spill); a padded-K copy of
            # x would fix it at the cost of one extra HBM pass.
        grid_k = _cdiv(input_size, tk)

        resident_w = (grid_n == 1 and grid_k == 1)
        est = working_set(tk, 1 if resident_w else 2)
        flops = 2 * m * input_size * n_pad
        bytes_accessed = (m * input_size + input_size * n_pad + n_pad
                          + m * n_pad) * itemsize

        def build_specs(single_buffer):
            def spec(shape, index_map, constant):
                if constant and single_buffer:
                    return pl.BlockSpec(shape, index_map,
                                        pipeline_mode=pl.Buffered(1))
                return pl.BlockSpec(shape, index_map)

            if grid_k == 1:
                kernel = _fused_kernel
                grid = (grid_m, grid_n)
                in_specs = [
                    pl.BlockSpec((tm, input_size), lambda i, j: (i, 0)),
                    spec((input_size, tn), lambda i, j: (0, j), grid_n == 1),
                    spec((1, tn), lambda i, j: (0, j), grid_n == 1),
                ]
                out_specs = pl.BlockSpec((tm, tn), lambda i, j: (i, j))
                scratch = []
                sems = ("parallel", "parallel")
            else:
                kernel = _fused_kernel_ksplit
                grid = (grid_m, grid_n, grid_k)
                in_specs = [
                    pl.BlockSpec((tm, tk), lambda i, j, k: (i, k)),
                    pl.BlockSpec((tk, tn), lambda i, j, k: (k, j)),
                    spec((1, tn), lambda i, j, k: (0, j), grid_n == 1),
                ]
                out_specs = pl.BlockSpec((tm, tn), lambda i, j, k: (i, j))
                scratch = [pltpu.VMEM((tm, tn), jnp.float32)]
                sems = ("parallel", "parallel", "arbitrary")
            return kernel, grid, in_specs, out_specs, scratch, sems

        operands = (x2d, w, b2d)
    else:
        w0t, w1t, b2d = params["w0t"], params["w1t"], params["b"]
        r = params["r"]
        w_itemsize = jnp.dtype(w0t.dtype).itemsize
        est = (2 * tm * input_size * itemsize
               + (input_size * r + r * n_pad + n_pad) * w_itemsize
               + 2 * tm * n_pad * itemsize)
        flops = 2 * m * input_size * r + 2 * m * r * n_pad
        bytes_accessed = (m * input_size + input_size * r + r * n_pad + n_pad
                          + m * n_pad) * itemsize

        def build_specs(single_buffer):
            def spec(shape, index_map):
                if single_buffer:
                    return pl.BlockSpec(shape, index_map,
                                        pipeline_mode=pl.Buffered(1))
                return pl.BlockSpec(shape, index_map)

            kernel = _factored_kernel
            grid = (grid_m,)
            in_specs = [
                pl.BlockSpec((tm, input_size), lambda i: (i, 0)),
                spec((input_size, r), lambda i: (0, 0)),
                spec((r, n_pad), lambda i: (0, 0)),
                spec((1, n_pad), lambda i: (0, 0)),
            ]
            out_specs = pl.BlockSpec((tm, n_pad), lambda i: (i, 0))
            return kernel, grid, in_specs, out_specs, [], ("parallel",)

        operands = (x2d, w0t, w1t, b2d)

    if vmem_limit_bytes is None:
        vmem_limit_bytes = int(min(max(est + (4 << 20), 32 << 20), budget))

    def run(single_buffer_weights):
        kernel, grid, in_specs, out_specs, scratch, sems = build_specs(
            single_buffer_weights)
        return pl.pallas_call(
            kernel,
            out_shape=jax.ShapeDtypeStruct((m, n_pad), x.dtype),
            grid_spec=pltpu.PrefetchScalarGridSpec(
                num_scalar_prefetch=0,
                grid=grid,
                in_specs=in_specs,
                out_specs=out_specs,
                scratch_shapes=scratch,
            ),
            compiler_params=pltpu.CompilerParams(
                dimension_semantics=sems,
                vmem_limit_bytes=vmem_limit_bytes,
            ),
            cost_estimate=pl.CostEstimate(
                flops=int(flops), transcendentals=0,
                bytes_accessed=int(bytes_accessed)),
        )(*operands)

    try:
        out = run(True)    # resident weights single-buffered (saves VMEM)
    except Exception:
        out = run(False)   # fallback: default double buffering everywhere

    if n_pad != output_size:
        out = out[:, :output_size]
    return out.reshape(*lead_shape, output_size)


def svd_forward(x, w0, w1, b=None, *, tm=None, tn=512, tk=None, fuse=None,
                vmem_limit_bytes=None):
    """Computes lin1(lin0(x)) exactly like the PyTorch SVD module forward.

    For repeated inference, call svd_prepare() once per weight update and
    svd_apply() per step to avoid re-doing the weight preprocessing.
    """
    params = svd_prepare(w0, w1, b, fuse=fuse)
    return svd_apply(x, params, tm=tm, tn=tn, tk=tk,
                     vmem_limit_bytes=vmem_limit_bytes)


if __name__ == "__main__":
    # Module config: SVD(input_size=32, output_size=16, r=8, bias=True)
    input_size, output_size, r = 32, 16, 8
    batch, seq = 2, 8

    key = jax.random.PRNGKey(0)
    kx, k0, k1, kb, kx2 = jax.random.split(key, 5)

    x = jax.random.normal(kx, (batch, seq, input_size), dtype=jnp.float32)
    # PyTorch Linear convention: weight is (out_features, in_features).
    w0 = jax.random.normal(k0, (r, input_size), dtype=jnp.float32) * 0.1
    w1 = jax.random.normal(k1, (output_size, r), dtype=jnp.float32) * 0.1
    b = jax.random.normal(kb, (output_size,), dtype=jnp.float32) * 0.01

    ref = (x @ w0.T) @ w1.T + b

    # 1) Default path (fused for this small-rank config), cached weight prep.
    params = svd_prepare(w0, w1, b)
    out_fused = jax.block_until_ready(svd_apply(x, params))
    assert out_fused.shape == (batch, seq, output_size)
    assert jnp.allclose(out_fused, ref, atol=1e-4, rtol=1e-4)

    # 2) Forced factored two-GEMM path — same semantics.
    out_fact = jax.block_until_ready(svd_forward(x, w0, w1, b, fuse=False))
    assert jnp.allclose(out_fact, ref, atol=1e-4, rtol=1e-4)

    # 3) Ragged row count (masked last row block, no jnp.pad of x).
    x3 = jax.random.normal(kx2, (50, input_size), dtype=jnp.float32)
    ref3 = (x3 @ w0.T) @ w1.T + b
    out3 = jax.block_until_ready(svd_forward(x3, w0, w1, b, tm=16))
    assert out3.shape == (50, output_size)
    assert jnp.allclose(out3, ref3, atol=1e-4, rtol=1e-4)

    # 4) No-bias variant (lin1 bias=False).
    ref4 = (x @ w0.T) @ w1.T
    out4 = jax.block_until_ready(svd_forward(x, w0, w1, None))
    assert jnp.allclose(out4, ref4, atol=1e-4, rtol=1e-4)

    print("KERNEL_OK")
</pallas_src>

<mosaic_0001>
module attributes {stable_mosaic.version = 11 : i64} {
  func.func @_fused_kernel(%arg0: i32, %arg1: i32, %arg2: memref<16x32xf32, #tpu.memory_space<vmem>>, %arg3: memref<32x128xf32, #tpu.memory_space<vmem>>, %arg4: memref<1x128xf32, #tpu.memory_space<vmem>>, %arg5: memref<16x128xf32, #tpu.memory_space<vmem>>) attributes {dimension_semantics = [#tpu.dimension_semantics<parallel>, #tpu.dimension_semantics<parallel>], iteration_bounds = array<i64: 1, 1>, scalar_prefetch = 0 : i64, scratch_operands = 0 : i64, tpu.core_type = #tpu.core_type<tc>, window_params = [{transform_indices = @transform_0, window_bounds = array<i64: 16, 32>}, {pipeline_mode = #tpu.pipeline_mode<synchronous>, transform_indices = @transform_1, window_bounds = array<i64: 32, 128>}, {pipeline_mode = #tpu.pipeline_mode<synchronous>, transform_indices = @transform_2, window_bounds = array<i64: 1, 128>}, {transform_indices = @transform_3, window_bounds = array<i64: 16, 128>}]} {
    %c0 = arith.constant 0 : index
    %c0_0 = arith.constant 0 : index
    %0 = vector.load %arg2[%c0, %c0_0] : memref<16x32xf32, #tpu.memory_space<vmem>>, vector<16x32xf32>
    %c0_1 = arith.constant 0 : index
    %c0_2 = arith.constant 0 : index
    %1 = vector.load %arg3[%c0_1, %c0_2] : memref<32x128xf32, #tpu.memory_space<vmem>>, vector<32x128xf32>
    %cst = arith.constant dense<0.000000e+00> : vector<16x128xf32>
    %2 = tpu.matmul %0, %1, %cst {dimension_numbers = #tpu.dot_dimension_numbers<[1], [0], [0], [1], [0, 0, 1, 1], [], []>} : vector<16x32xf32>, vector<32x128xf32>, vector<16x128xf32> -> vector<16x128xf32>
    %c0_3 = arith.constant 0 : index
    %c0_4 = arith.constant 0 : index
    %3 = vector.load %arg4[%c0_3, %c0_4] : memref<1x128xf32, #tpu.memory_space<vmem>>, vector<1x128xf32>
    %4 = vector.broadcast %3 : vector<1x128xf32> to vector<16x128xf32>
    %5 = arith.addf %2, %4 : vector<16x128xf32>
    %c0_5 = arith.constant 0 : index
    %c0_6 = arith.constant 0 : index
    %6 = vector.load %arg5[%c0_5, %c0_6] : memref<16x128xf32, #tpu.memory_space<vmem>>, vector<16x128xf32>
    tpu.vector_store %arg5[%c0_5, %c0_6], %5 {strides = array<i32>} : memref<16x128xf32, #tpu.memory_space<vmem>>, vector<16x128xf32>,
    return
  }
  func.func @transform_0(%arg0: i32, %arg1: i32) -> (i32, i32) {
    %c0_i32 = arith.constant 0 : i32
    %c0_i32_0 = arith.constant 0 : i32
    return %arg0, %c0_i32 : i32, i32
  }
  func.func @transform_1(%arg0: i32, %arg1: i32) -> (i32, i32) {
    %c0_i32 = arith.constant 0 : i32
    %c0_i32_0 = arith.constant 0 : i32
    return %c0_i32, %arg1 : i32, i32
  }
  func.func @transform_2(%arg0: i32, %arg1: i32) -> (i32, i32) {
    %c0_i32 = arith.constant 0 : i32
    %c0_i32_0 = arith.constant 0 : i32
    return %c0_i32, %arg1 : i32, i32
  }
  func.func @transform_3(%arg0: i32, %arg1: i32) -> (i32, i32) {
    %c0_i32 = arith.constant 0 : i32
    return %arg0, %arg1 : i32, i32
  }
}

module attributes {stable_mosaic.version = 11 : i64} {
  func.func @_fused_kernel(%arg0: i32, %arg1: i32, %arg2: memref<16x32xf32, #tpu.memory_space<vmem>>, %arg3: memref<32x128xf32, #tpu.memory_space<vmem>>, %arg4: memref<1x128xf32, #tpu.memory_space<vmem>>, %arg5: memref<16x128xf32, #tpu.memory_space<vmem>>) attributes {dimension_semantics = [#tpu.dimension_semantics<parallel>, #tpu.dimension_semantics<parallel>], iteration_bounds = array<i64: 1, 1>, scalar_prefetch = 0 : i64, scratch_operands = 0 : i64, tpu.core_type = #tpu.core_type<tc>, window_params = [{transform_indices = @transform_0, window_bounds = array<i64: 16, 32>}, {transform_indices = @transform_1, window_bounds = array<i64: 32, 128>}, {transform_indices = @transform_2, window_bounds = array<i64: 1, 128>}, {transform_indices = @transform_3, window_bounds = array<i64: 16, 128>}]} {
    %c0 = arith.constant 0 : index
    %c0_0 = arith.constant 0 : index
    %0 = vector.load %arg2[%c0, %c0_0] : memref<16x32xf32, #tpu.memory_space<vmem>>, vector<16x32xf32>
    %c0_1 = arith.constant 0 : index
    %c0_2 = arith.constant 0 : index
    %1 = vector.load %arg3[%c0_1, %c0_2] : memref<32x128xf32, #tpu.memory_space<vmem>>, vector<32x128xf32>
    %cst = arith.constant dense<0.000000e+00> : vector<16x128xf32>
    %2 = tpu.matmul %0, %1, %cst {dimension_numbers = #tpu.dot_dimension_numbers<[1], [0], [0], [1], [0, 0, 1, 1], [], []>} : vector<16x32xf32>, vector<32x128xf32>, vector<16x128xf32> -> vector<16x128xf32>
    %c0_3 = arith.constant 0 : index
    %c0_4 = arith.constant 0 : index
    %3 = vector.load %arg4[%c0_3, %c0_4] : memref<1x128xf32, #tpu.memory_space<vmem>>, vector<1x128xf32>
    %4 = vector.broadcast %3 : vector<1x128xf32> to vector<16x128xf32>
    %5 = arith.addf %2, %4 : vector<16x128xf32>
    %c0_5 = arith.constant 0 : index
    %c0_6 = arith.constant 0 : index
    %6 = vector.load %arg5[%c0_5, %c0_6] : memref<16x128xf32, #tpu.memory_space<vmem>>, vector<16x128xf32>
    tpu.vector_store %arg5[%c0_5, %c0_6], %5 {strides = array<i32>} : memref<16x128xf32, #tpu.memory_space<vmem>>, vector<16x128xf32>,
    return
  }
  func.func @transform_0(%arg0: i32, %arg1: i32) -> (i32, i32) {
    %c0_i32 = arith.constant 0 : i32
    %c0_i32_0 = arith.constant 0 : i32
    return %arg0, %c0_i32 : i32, i32
  }
  func.func @transform_1(%arg0: i32, %arg1: i32) -> (i32, i32) {
    %c0_i32 = arith.constant 0 : i32
    %c0_i32_0 = arith.constant 0 : i32
    return %c0_i32, %arg1 : i32, i32
  }
  func.func @transform_2(%arg0: i32, %arg1: i32) -> (i32, i32) {
    %c0_i32 = arith.constant 0 : i32
    %c0_i32_0 = arith.constant 0 : i32
    return %c0_i32, %arg1 : i32, i32
  }
  func.func @transform_3(%arg0: i32, %arg1: i32) -> (i32, i32) {
    %c0_i32 = arith.constant 0 : i32
    return %arg0, %arg1 : i32, i32
  }
}

</mosaic_0001>

<bundles_post_ra>
// kernel: tpu_custom_call.1
= control target key start
LH: loop header
LB: loop body
LE: loop exit
PB: predicated region body
PF: predicated region fallthrough
CT: control target
= control target key end

     0   :  { %8 = vsyncpa [#allocation3], 0  ;;  %s245_s0 = inlined_call_operand.hbm [shape: f32[16,32], index: 0, kind: input, shape index: {}]   ;;  %s246_s1 = inlined_call_operand.hbm [shape: f32[32,128], index: 1, kind: input, shape index: {}]   ;;  %s247_s2 = inlined_call_operand.vmem [shape: f32[1,128], index: 2, kind: input, shape index: {}]   ;;  %s248_s3 = inlined_call_operand.hbm [shape: f32[16,128], index: 3, kind: output, shape index: {}]  }
   0x1   :  { %9 = vsyncpa [#allocation6], 0 }
   0x2   :  { %10 = vsyncpa [#allocation4], 0  ;;  %s15_s14 = sshll.u32 %s245_s0, 4  ;;  %s199_s15 = smov [#allocation2]   ;;  %s16_s14 = int_to_ptr.hbm [resolvable:$true] %s15_s14 }
   0x3   :  { %s17_s16 = sshll.u32 %s199_s15, 4  ;;  %s28_s19 = sshll.u32 %s246_s1, 4  ;;  %s18_s16 = int_to_ptr.vmem [resolvable:$true] %s17_s16  ;;  %s29_s19 = int_to_ptr.hbm [resolvable:$true] %s28_s19 }
   0x4   :  { %s200_s20 = smov 128   ;;  %s201_s21 = smov 8  }
   0x5   :  { %23 = dma.hbm_to_vmem [thread:$0]  %s16_s14, 256, %s18_s16, [#allocation3], %s200_s20, %s200_s20, %s201_s21  }
   0x6   :  { %s202_s22 = smov [#allocation5]  }
   0x7   :  { %s30_s23 = sshll.u32 %s202_s22, 4  ;;  %s31_s23 = int_to_ptr.vmem [resolvable:$true] %s30_s23 }
   0x8   :  { %36 = dma.hbm_to_vmem [thread:$0]  %s29_s19, 512, %s31_s23, [#allocation6], %s200_s20, %s200_s20, %s201_s21  }
   0x9   :  { %193 = dma.done.wait [#allocation3], 256  }
   0xa   :  { %194 = vsyncadd [#allocation3], 4294967040 }
   0xb   :  { %195 = dma.done.wait [#allocation6], 512  }
   0xc   :  { %196 = vsyncadd [#allocation6], 4294966784  ;;  %v52_v0 = vld [vmem:[#allocation5 + $0x18] sm:$0xff]  ;;  %v51_v1 = vld [vmem:[#allocation5 + $0x10] sm:$0xff]  ;;  %vm57_vm0 = vcmask 261120   ;;  %s203_s24 = smov [#allocation7]  }
   0xd   :  { %76 = vmatpush.msra.mxu0 %v52_v0  ;;  %111 = vmatpush.msra.mxu1 %v52_v0  ;;  %v50_v2 = vld [vmem:[#allocation5 + $0x8] sm:$0xff]  ;;  %v49_v3 = vld [vmem:[#allocation5] sm:$0xff]  ;;  %v47_v4 = vld [vmem:[#allocation2] sm:$0xff]  ;;  %s93_s25 = sshll.u32 %s203_s24, 4  ;;  %s95_s28 = sshll.u32 %s248_s3, 4  ;;  %s94_s25 = int_to_ptr.vmem [resolvable:$true] %s93_s25  ;;  %s96_s28 = int_to_ptr.hbm [resolvable:$true] %s95_s28 }
   0xe   :  { %v48_v5 = vld [vmem:[#allocation2 + $0x8] sm:$0xff]  ;;  %v120_v6 = vld [vmem:[%s247_s2] ss:$0 sm:$0xff] }
   0xf   :  { %77 = vmatpush.msra.mxu0 %v51_v1  ;;  %112 = vmatpush.msra.mxu1 %v51_v1 }
  0x11   :  { %78 = vmatpush.msra.mxu0 %v50_v2  ;;  %113 = vmatpush.msra.mxu1 %v50_v2 }
  0x13   :  { %79 = vmatpush.msra.mxu0 %v49_v3  ;;  %114 = vmatpush.msra.mxu1 %v49_v3 }
  0x14   :  { %109 = vmatmul.msk.f32.vlgmr.msra.gmra.mxu0 %vm57_vm0, %v47_v4  ;;  %110 = vmatmul.msk.f32.vlgmr.msra.gmra.mxu1 %vm57_vm0, %v48_v5 }
  0x91   :  { %v81_v7 = vpop.f32.mrf.mxu0  ;;  %v84_v8 = vpop.f32.mrf.mxu1 }
  0x92   :  { %v82_v9 = vadd.f32 %v120_v6, %v81_v7  ;;  %v85_v10 = vadd.f32 %v120_v6, %v84_v8 }
  0x94   :  { %87 = vst [vmem:[#allocation7] sm:$0xff] %v82_v9 }
  0x95   :  { %88 = vst [vmem:[#allocation7 + $0x8] sm:$0xff] %v85_v10 }
  0x96   :  { %101 = dma.vmem_to_hbm [thread:$0]  %s94_s25, 256, %s96_s28, [#allocation4], %s200_s20, %s200_s20, %s201_s21  }
  0x97   :  { %197 = dma.done.wait [#allocation4], 256  }
  0x98   :  { %198 = vsyncadd [#allocation4], 4294967040 }
  0x99   :  { %106 = vsyncpa [#allocation3], 1 }
  0x9a   :  { %107 = vsyncpa [#allocation6], 1 }
  0x9b   :  { %108 = vsyncpa [#allocation4], 1 }

// kernel: tpu_custom_call.1
= control target key start
LH: loop header
LB: loop body
LE: loop exit
PB: predicated region body
PF: predicated region fallthrough
CT: control target
= control target key end

     0   :  { %8 = vsyncpa [#allocation3], 0  ;;  %s245_s0 = inlined_call_operand.hbm [shape: f32[16,32], index: 0, kind: input, shape index: {}]   ;;  %s246_s1 = inlined_call_operand.hbm [shape: f32[32,128], index: 1, kind: input, shape index: {}]   ;;  %s247_s2 = inlined_call_operand.vmem [shape: f32[1,128], index: 2, kind: input, shape index: {}]   ;;  %s248_s3 = inlined_call_operand.hbm [shape: f32[16,128], index: 3, kind: output, shape index: {}]  }
   0x1   :  { %9 = vsyncpa [#allocation6], 0 }
   0x2   :  { %10 = vsyncpa [#allocation4], 0  ;;  %s15_s14 = sshll.u32 %s245_s0, 4  ;;  %s199_s15 = smov [#allocation2]   ;;  %s16_s14 = int_to_ptr.hbm [resolvable:$true] %s15_s14 }
   0x3   :  { %s17_s16 = sshll.u32 %s199_s15, 4  ;;  %s28_s19 = sshll.u32 %s246_s1, 4  ;;  %s18_s16 = int_to_ptr.vmem [resolvable:$true] %s17_s16  ;;  %s29_s19 = int_to_ptr.hbm [resolvable:$true] %s28_s19 }
   0x4   :  { %s200_s20 = smov 128   ;;  %s201_s21 = smov 8  }
   0x5   :  { %23 = dma.hbm_to_vmem [thread:$0]  %s16_s14, 256, %s18_s16, [#allocation3], %s200_s20, %s200_s20, %s201_s21  }
   0x6   :  { %s202_s22 = smov [#allocation5]  }
   0x7   :  { %s30_s23 = sshll.u32 %s202_s22, 4  ;;  %s31_s23 = int_to_ptr.vmem [resolvable:$true] %s30_s23 }
   0x8   :  { %36 = dma.hbm_to_vmem [thread:$0]  %s29_s19, 512, %s31_s23, [#allocation6], %s200_s20, %s200_s20, %s201_s21  }
   0x9   :  { %193 = dma.done.wait [#allocation3], 256  }
   0xa   :  { %194 = vsyncadd [#allocation3], 4294967040 }
   0xb   :  { %195 = dma.done.wait [#allocation6], 512  }
   0xc   :  { %196 = vsyncadd [#allocation6], 4294966784  ;;  %v52_v0 = vld [vmem:[#allocation5 + $0x18] sm:$0xff]  ;;  %v51_v1 = vld [vmem:[#allocation5 + $0x10] sm:$0xff]  ;;  %vm57_vm0 = vcmask 261120   ;;  %s203_s24 = smov [#allocation7]  }
   0xd   :  { %76 = vmatpush.msra.mxu0 %v52_v0  ;;  %111 = vmatpush.msra.mxu1 %v52_v0  ;;  %v50_v2 = vld [vmem:[#allocation5 + $0x8] sm:$0xff]  ;;  %v49_v3 = vld [vmem:[#allocation5] sm:$0xff]  ;;  %v47_v4 = vld [vmem:[#allocation2] sm:$0xff]  ;;  %s93_s25 = sshll.u32 %s203_s24, 4  ;;  %s95_s28 = sshll.u32 %s248_s3, 4  ;;  %s94_s25 = int_to_ptr.vmem [resolvable:$true] %s93_s25  ;;  %s96_s28 = int_to_ptr.hbm [resolvable:$true] %s95_s28 }
   0xe   :  { %v48_v5 = vld [vmem:[#allocation2 + $0x8] sm:$0xff]  ;;  %v120_v6 = vld [vmem:[%s247_s2] ss:$0 sm:$0xff] }
   0xf   :  { %77 = vmatpush.msra.mxu0 %v51_v1  ;;  %112 = vmatpush.msra.mxu1 %v51_v1 }
  0x11   :  { %78 = vmatpush.msra.mxu0 %v50_v2  ;;  %113 = vmatpush.msra.mxu1 %v50_v2 }
  0x13   :  { %79 = vmatpush.msra.mxu0 %v49_v3  ;;  %114 = vmatpush.msra.mxu1 %v49_v3 }
  0x14   :  { %109 = vmatmul.msk.f32.vlgmr.msra.gmra.mxu0 %vm57_vm0, %v47_v4  ;;  %110 = vmatmul.msk.f32.vlgmr.msra.gmra.mxu1 %vm57_vm0, %v48_v5 }
  0x91   :  { %v81_v7 = vpop.f32.mrf.mxu0  ;;  %v84_v8 = vpop.f32.mrf.mxu1 }
  0x92   :  { %v82_v9 = vadd.f32 %v120_v6, %v81_v7  ;;  %v85_v10 = vadd.f32 %v120_v6, %v84_v8 }
  0x94   :  { %87 = vst [vmem:[#allocation7] sm:$0xff] %v82_v9 }
  0x95   :  { %88 = vst [vmem:[#allocation7 + $0x8] sm:$0xff] %v85_v10 }
  0x96   :  { %101 = dma.vmem_to_hbm [thread:$0]  %s94_s25, 256, %s96_s28, [#allocation4], %s200_s20, %s200_s20, %s201_s21  }
  0x97   :  { %197 = dma.done.wait [#allocation4], 256  }
  0x98   :  { %198 = vsyncadd [#allocation4], 4294967040 }
  0x99   :  { %106 = vsyncpa [#allocation3], 1 }
  0x9a   :  { %107 = vsyncpa [#allocation6], 1 }
  0x9b   :  { %108 = vsyncpa [#allocation4], 1 }

</bundles_post_ra>
